<compile_context>
chip_gen: v7x
topology: tpu7x:2x2x1
jax: 0.10.0
libtpu: 0.0.40
codegen_flags: <defaults>
</compile_context>

<pallas_src>
import math

import jax
import jax.numpy as jnp
from jax.experimental import pallas as pl
from jax.experimental.pallas import tpu as pltpu

_TWO_PI = 2.0 * math.pi

# Dispatch on total output bytes, not batch size: below a few MiB the fused
# XLA mul+sin+cos+concat is already near the HBM roofline and pallas_call
# launch overhead would be a regression.
_PALLAS_MIN_OUT_BYTES = 4 * 1024 * 1024

# Per-step VMEM budget for one output tile (pipeline double-buffers it).
_OUT_TILE_BYTES = 8 * 1024 * 1024
_MAX_TB = 32768


def _posemb_kernel(x_ref, w_ref, out_ref):
    # x_ref: (1, TB), w_ref: (H, 1), out_ref: (2H + 1, TB), rows = [x | sin | cos].
    # Lane-dense: batch on lanes -> full vreg occupancy for sin/cos and the stores.
    half = w_ref.shape[0]
    x_row = x_ref[...]                                 # (1, TB)
    freqs = w_ref[...] * (x_row * _TWO_PI)             # (H, TB) VPU broadcast
    out_ref[0:1, :] = x_row.astype(out_ref.dtype)
    out_ref[1:1 + half, :] = jnp.sin(freqs).astype(out_ref.dtype)
    out_ref[1 + half:1 + 2 * half, :] = jnp.cos(freqs).astype(out_ref.dtype)


def _posemb_pallas(x, weights, *, out_dtype=jnp.float32):
    """x: (B,), weights: (H,) -> (B, 2H + 1) = [x | sin(2*pi*x*w) | cos(2*pi*x*w)]."""
    b = x.shape[0]
    half = weights.shape[0]
    rows = 2 * half + 1

    # Lane (batch) tile: multiple of 128, sized from the output-tile VMEM budget.
    b128 = pl.cdiv(b, 128) * 128
    tb = max(128, min(_MAX_TB, (_OUT_TILE_BYTES // (rows * 4)) // 128 * 128))
    tb = min(tb, b128)
    if b128 >= 256:
        # Keep at least 2 grid steps so "parallel" can shard across both v7x
        # TensorCores (no effect on single-core v5e/v6e).
        tb = min(tb, pl.cdiv(b128 // 2, 128) * 128)
    b_pad = pl.cdiv(b, tb) * tb

    x_row = x.astype(jnp.float32).reshape(1, b)
    if b_pad != b:
        x_row = jnp.pad(x_row, ((0, 0), (0, b_pad - b)))
    w_col = weights.astype(jnp.float32).reshape(half, 1)

    out_t = pl.pallas_call(
        _posemb_kernel,
        out_shape=jax.ShapeDtypeStruct((rows, b_pad), out_dtype),
        grid=(b_pad // tb,),
        in_specs=[
            pl.BlockSpec((1, tb), lambda i: (0, i)),     # batch tile of x (lanes)
            pl.BlockSpec((half, 1), lambda i: (0, 0)),   # full weights column
        ],
        out_specs=pl.BlockSpec((rows, tb), lambda i: (0, i)),
        compiler_params=pltpu.CompilerParams(
            dimension_semantics=("parallel",),           # megacore sharding on v7x
            vmem_limit_bytes=32 * 1024 * 1024,           # safe on v5e/v6e/v7x
        ),
    )(x_row, w_col)

    # Transpose back to (B, 2H+1); transpose + tail-slice fuse into one XLA pass.
    return out_t.T[:b]


def random_or_learned_sinusoidal_pos_emb(x, weights, *, use_pallas=None):
    """Forward of RandomOrLearnedSinusoidalPosEmb: (B,) -> (B, 2*half_dim + 1)."""
    assert x.ndim == 1
    assert weights.ndim == 1
    b = x.shape[0]
    half = weights.shape[0]
    if use_pallas is None:
        use_pallas = b * (2 * half + 1) * 4 >= _PALLAS_MIN_OUT_BYTES
    if use_pallas:
        return _posemb_pallas(x, weights)
    # Small-problem fallback: a single fused XLA pass is already near roofline.
    x2d = x.reshape(b, 1).astype(jnp.float32)
    freqs = (x2d * _TWO_PI) * weights[None, :].astype(jnp.float32)
    return jnp.concatenate([x2d, jnp.sin(freqs), jnp.cos(freqs)], axis=-1)


def reference(x, weights):
    x2 = x[:, None].astype(jnp.float32)
    freqs = x2 * weights[None, :].astype(jnp.float32) * _TWO_PI
    return jnp.concatenate([x2, jnp.sin(freqs), jnp.cos(freqs)], axis=-1)


if __name__ == "__main__":
    dim = 16                 # must be even; half_dim = 8
    batch = 8

    key = jax.random.PRNGKey(0)
    k_w, k_x = jax.random.split(key)
    # nn.Parameter(torch.randn(half_dim)) -> deterministic normal init here
    weights = jax.random.normal(k_w, (dim // 2,), dtype=jnp.float32)
    x = jax.random.normal(k_x, (batch,), dtype=jnp.float32)

    # Force the Pallas path to exercise the kernel at this small demo size.
    out = jax.block_until_ready(
        random_or_learned_sinusoidal_pos_emb(x, weights, use_pallas=True))
    ref = reference(x, weights)
    assert out.shape == (batch, dim + 1), out.shape
    assert jnp.allclose(out, ref, atol=1e-5, rtol=1e-5), "pallas mismatch vs reference"

    # Also sanity-check the auto-dispatch (XLA fallback) path.
    out_fallback = jax.block_until_ready(
        random_or_learned_sinusoidal_pos_emb(x, weights))
    assert jnp.allclose(out_fallback, ref, atol=1e-5, rtol=1e-5)

    print("KERNEL_OK")
</pallas_src>

<mosaic_0001>
module attributes {stable_mosaic.version = 11 : i64} {
  func.func @_posemb_kernel(%arg0: i32, %arg1: memref<1x128xf32, #tpu.memory_space<vmem>>, %arg2: memref<8x1xf32, #tpu.memory_space<vmem>>, %arg3: memref<17x128xf32, #tpu.memory_space<vmem>>) attributes {dimension_semantics = [#tpu.dimension_semantics<parallel>], iteration_bounds = array<i64: 1>, scalar_prefetch = 0 : i64, scratch_operands = 0 : i64, tpu.core_type = #tpu.core_type<tc>, window_params = [{transform_indices = @transform_0, window_bounds = array<i64: 1, 128>}, {pipeline_mode = #tpu.pipeline_mode<synchronous>, transform_indices = @transform_1, window_bounds = array<i64: 8, 1>}, {transform_indices = @transform_2, window_bounds = array<i64: 17, 128>}]} {
    %c0 = arith.constant 0 : index
    %c0_0 = arith.constant 0 : index
    %0 = vector.load %arg1[%c0, %c0_0] : memref<1x128xf32, #tpu.memory_space<vmem>>, vector<1x128xf32>
    %c0_1 = arith.constant 0 : index
    %c0_2 = arith.constant 0 : index
    %1 = vector.load %arg2[%c0_1, %c0_2] : memref<8x1xf32, #tpu.memory_space<vmem>>, vector<8x1xf32>
    %cst = arith.constant 6.28318548 : f32
    %2 = vector.broadcast %cst : f32 to vector<1x128xf32>
    %3 = arith.mulf %0, %2 : vector<1x128xf32>
    %4 = vector.broadcast %1 : vector<8x1xf32> to vector<8x128xf32>
    %5 = vector.broadcast %3 : vector<1x128xf32> to vector<8x128xf32>
    %6 = arith.mulf %4, %5 : vector<8x128xf32>
    %c0_3 = arith.constant 0 : index
    %c0_4 = arith.constant 0 : index
    %7 = vector.load %arg3[%c0_3, %c0_4] : memref<17x128xf32, #tpu.memory_space<vmem>>, vector<1x128xf32>
    tpu.vector_store %arg3[%c0_3, %c0_4], %0 {strides = array<i32>} : memref<17x128xf32, #tpu.memory_space<vmem>>, vector<1x128xf32>,
    %8 = math.sin %6 : vector<8x128xf32>
    %c1 = arith.constant 1 : index
    %c0_5 = arith.constant 0 : index
    %9 = vector.load %arg3[%c1, %c0_5] : memref<17x128xf32, #tpu.memory_space<vmem>>, vector<8x128xf32>
    tpu.vector_store %arg3[%c1, %c0_5], %8 {strides = array<i32>} : memref<17x128xf32, #tpu.memory_space<vmem>>, vector<8x128xf32>,
    %10 = math.cos %6 : vector<8x128xf32>
    %c9 = arith.constant 9 : index
    %c0_6 = arith.constant 0 : index
    %11 = vector.load %arg3[%c9, %c0_6] : memref<17x128xf32, #tpu.memory_space<vmem>>, vector<8x128xf32>
    tpu.vector_store %arg3[%c9, %c0_6], %10 {strides = array<i32>} : memref<17x128xf32, #tpu.memory_space<vmem>>, vector<8x128xf32>,
    return
  }
  func.func @transform_0(%arg0: i32) -> (i32, i32) {
    %c0_i32 = arith.constant 0 : i32
    %c0_i32_0 = arith.constant 0 : i32
    return %c0_i32, %arg0 : i32, i32
  }
  func.func @transform_1(%arg0: i32) -> (i32, i32) {
    %c0_i32 = arith.constant 0 : i32
    %c0_i32_0 = arith.constant 0 : i32
    %c0_i32_1 = arith.constant 0 : i32
    return %c0_i32, %c0_i32_0 : i32, i32
  }
  func.func @transform_2(%arg0: i32) -> (i32, i32) {
    %c0_i32 = arith.constant 0 : i32
    %c0_i32_0 = arith.constant 0 : i32
    return %c0_i32, %arg0 : i32, i32
  }
}

</mosaic_0001>

<bundles_post_ra>
// kernel: tpu_custom_call.1
= control target key start
LH: loop header
LB: loop body
LE: loop exit
PB: predicated region body
PF: predicated region fallthrough
CT: control target
= control target key end

     0   :  { %v304_v1 = vmov 0   ;;  %s368_s0 = inlined_call_operand.vmem [shape: f32[1,128], index: 0, kind: input, shape index: {}]   ;;  %s369_s1 = inlined_call_operand.vmem [shape: f32[8,1], index: 1, kind: input, shape index: {}]   ;;  %s370_s2 = inlined_call_operand.hbm [shape: f32[17,128], index: 2, kind: output, shape index: {}]  }
   0x1   :  { %v13_v0 = vld [vmem:[%s369_s1] sm:$0xff]  ;;  %275 = vset.pattern.permute.xlu0 %v304_v1 }
   0x2   :  { %17 = vperm.xlu0 %275, %v13_v0   ;;  %v12_v2 = vld [vmem:[%s368_s0] sm:$0x1] }
   0x3   :  { %27 = vst [vmem:[#allocation2] sm:$0x1] %v12_v2 }
   0x4   :  { %7 = vsyncpa [#allocation3], 0  ;;  %v21_v3 = vlaneseq  ;;  %v14_v6 = vmul.f32 6.2831855, %v12_v2  ;;  %v305_v20 = vmov 683565275  }
   0x5   :  { %v306_v22 = vmov 2475754826   ;;  %v307_v25 = vmov 2131351028   ;;  %v308_v28 = vmov 2102212464  }
   0x6   :  { %v22_v4 = vshrl.u32 %v21_v3, 7  ;;  %v309_v31 = vmov 920167782   ;;  %v310_v34 = vmov 1326507024   ;;  %s311_s0 = smov [#allocation2]  }
   0x7   :  { %s242_s1 = sshll.u32 %s311_s0, 4  ;;  %s243_s1 = int_to_ptr.vmem [resolvable:$true] %s242_s1 }
   0x8   :  { %v23_v5 = vsub.s32 0, %v22_v4  ;;  %s280_s13 = scalar_lea.vmem %s243_s1, 384  ;;  %p285_p1 = scmp.lt.s32.totalorder %s243_s1, %s243_s1 }
   0x9   :  { %p281_p0 = scmp.ne.s32.totalorder %s243_s1, %s280_s13  ;;  %p286_p2 = scmp.lt.s32.totalorder %s280_s13, %s280_s13 }
   0xa   :  { %v24_v7 = vrot.slane %v14_v6, %v23_v5 }
   0xb   :  { %p287_p3 = por %p286_p2, %p285_p1 }
   0xd   :  { %p288_p4 = pnand %p287_p3, %p281_p0 }
  0x81   :  { %v18_v8 = vpop.permute.xlu0 %17 }
  0x82   :  { %v335_v9 = vmul.f32 %v24_v7, %v18_v8 }
  0x84   :  { %v31_v10 = vand.u32 2139095040, %v335_v9  ;;  %v28_v14 = vand.u32 2147483647, %v335_v9  ;;  %vm30_vm7 = vcmp.lt.s32.totalorder %v335_v9, 0  ;;  %vm120_vm15 = vweird.f32 %v335_v9 }
  0x86   :  { %v32_v11 = vshrl.u32 %v31_v10, 23  ;;  %v35_v17 = vand.u32 8388607, %v28_v14  ;;  %vm29_vm8 = vcmp.le.f32.partialorder %v28_v14, 0.7853982 }
  0x88   :  { %v253_v12 = vadd.s32 4294967169, %v32_v11  ;;  %v36_v36 = vor.u32 8388608, %v35_v17 }
  0x8a   :  { %v38_v13 = vadd.s32 1, %v253_v12  ;;  %v76_v50 = vshll.u32 %v36_v36, 8 }
  0x8c   :  { %vm39_vm0 = vcmp.gt.s32.totalorder %v38_v13, 0 }
  0x8d   :  { %v40_v15 = vsel %vm39_vm0, %v38_v13, 0 }
  0x8e   :  { %v42_v16 = vand.u32 31, %v40_v15  ;;  %v41_v19 = vshrl.u32 %v40_v15, 5 }
  0x90   :  { %v43_v18 = vsub.s32 32, %v42_v16  ;;  %v45_v21 = vshll.u32 %v305_v20, %v42_v16  ;;  %v48_v23 = vshll.u32 %v306_v22, %v42_v16  ;;  %v51_v27 = vshll.u32 %v307_v25, %v42_v16 }
  0x91   :  { %v54_v30 = vshll.u32 %v308_v28, %v42_v16  ;;  %v57_v33 = vshll.u32 %v309_v31, %v42_v16  ;;  %vm60_vm1 = vcmp.lt.s32.totalorder %v41_v19, 1  ;;  %vm63_vm2 = vcmp.lt.s32.totalorder %v41_v19, 4 }
  0x92   :  { %v46_v24 = vshrl.u32 %v306_v22, %v43_v18  ;;  %v49_v26 = vshrl.u32 %v307_v25, %v43_v18  ;;  %v52_v29 = vshrl.u32 %v308_v28, %v43_v18  ;;  %v55_v32 = vshrl.u32 %v309_v31, %v43_v18 }
  0x93   :  { %v58_v35 = vshrl.u32 %v310_v34, %v43_v18  ;;  %v44_v45 = vshrl.u32 %v305_v20, %v43_v18  ;;  %vm62_vm3 = vcmp.lt.s32.totalorder %v41_v19, 3  ;;  %vm61_vm4 = vcmp.lt.s32.totalorder %v41_v19, 2 }
  0x94   :  { %v47_v37 = vor.u32 %v46_v24, %v45_v21  ;;  %v50_v38 = vor.u32 %v49_v26, %v48_v23  ;;  %v53_v39 = vor.u32 %v52_v29, %v51_v27  ;;  %v56_v40 = vor.u32 %v55_v32, %v54_v30 }
  0x95   :  { %v59_v41 = vor.u32 %v58_v35, %v57_v33 }
  0x96   :  { %v65_v42 = vsel %vm63_vm2, %v53_v39, 2102212464  ;;  %v68_v43 = vsel %vm60_vm1, %v47_v37, %v50_v38  ;;  %v72_v44 = vsel %vm60_vm1, %v50_v38, %v53_v39  ;;  %v69_v46 = vsel %vm63_vm2, %v56_v40, 920167782 }
  0x97   :  { %v73_v47 = vsel %vm63_vm2, %v59_v41, 1326507024  ;;  %v70_v48 = vsel %vm62_vm3, %v53_v39, %v69_v46  ;;  %v64_v51 = vsel %vm60_vm1, %v44_v45, %v47_v37  ;;  %v66_v52 = vsel %vm62_vm3, %v50_v38, %v65_v42 }
  0x98   :  { %v74_v49 = vsel %vm62_vm3, %v56_v40, %v73_v47  ;;  %v71_v53 = vsel %vm61_vm4, %v68_v43, %v70_v48  ;;  %v67_v59 = vsel %vm61_vm4, %v64_v51, %v66_v52 }
  0x99   :  { %v75_v54 = vsel %vm61_vm4, %v72_v44, %v74_v49  ;;  %v344_v57 = vmul.u32.u64.low %v76_v50, %v71_v53  ;;  %v345_v58 = vmul.u32.u64.high %v76_v50, %v71_v53, %v344_v57  ;;  %v83_v61 = vmul.u32 %v76_v50, %v67_v59 }
  0x9a   :  { %v341_v55 = vmul.u32.u64.low %v76_v50, %v75_v54  ;;  %v342_v56 = vmul.u32.u64.high %v76_v50, %v75_v54, %v341_v55 }
  0x9b   :  { %v86_v60 = vadd.s32 1, %v345_v58 }
  0x9c   :  { %vm85_vm5 = vc.u32 %v342_v56, %v344_v57  ;;  %v84_v10 = vadd.s32 %v344_v57, %v342_v56 }
  0x9d   :  { %v87_v62 = vsel %vm85_vm5, %v86_v60, %v345_v58 }
  0x9e   :  { %v88_v63 = vadd.s32 %v87_v62, %v83_v61 }
  0xa0   :  { %v89_v0 = vadd.s32 536870912, %v88_v63 }
  0xa2   :  { %v90_v1 = vshrl.u32 %v89_v0, 30 }
  0xa4   :  { %v91_v2 = vshll.u32 %v90_v1, 30  ;;  %v114_v23 = vsub.s32 4, %v90_v1 }
  0xa6   :  { %v92_v3 = vsub.s32 %v88_v63, %v91_v2  ;;  %v115_v26 = vsel %vm30_vm7, %v114_v23, %v90_v1 }
  0xa7   :  { %v117_v28 = vsel %vm29_vm8, 0, %v115_v26 }
  0xa8   :  { %v94_v4 = vsub.s32 0, %v92_v3  ;;  %v121_v29 = vadd.s32 3, %v117_v28  ;;  %v226_v31 = vand.u32 3, %v117_v28 }
  0xaa   :  { %v254_v5 = vmin.u32 %v94_v4, %v92_v3  ;;  %v122_v30 = vand.u32 3, %v121_v29  ;;  %vm231_vm10 = vcmp.eq.s32.totalorder %v226_v31, 2  ;;  %vm228_vm12 = vcmp.eq.s32.totalorder %v226_v31, 0 }
  0xab   :  { %vm227_vm14 = vcmp.lt.s32.totalorder %v226_v31, 2 }
  0xac   :  { %v96_v6 = vclz %v254_v5  ;;  %vm127_vm9 = vcmp.eq.s32.totalorder %v122_v30, 2  ;;  %vm124_vm11 = vcmp.eq.s32.totalorder %v122_v30, 0  ;;  %vm123_vm13 = vcmp.lt.s32.totalorder %v122_v30, 2 }
  0xae   :  { %v255_v7 = vadd.s32 4294967294, %v96_v6 }
  0xb0   :  { %vm256_vm6 = vcmp.lt.s32.totalorder %v255_v7, 0 }
  0xb1   :  { %v99_v8 = vsel %vm256_vm6, 0, %v255_v7 }
  0xb2   :  { %v100_v11 = vsub.s32 32, %v99_v8  ;;  %v104_v12 = vsub.s32 4294967266, %v99_v8  ;;  %v101_v13 = vshll.u32 %v92_v3, %v99_v8 }
  0xb4   :  { %v102_v15 = vshrl.u32 %v84_v10, %v100_v11  ;;  %v105_v16 = vadd.s32 127, %v104_v12 }
  0xb6   :  { %v103_v17 = vor.u32 %v102_v15, %v101_v13  ;;  %v106_v18 = vshll.u32 %v105_v16, 23 }
  0xb8   :  { %v107_v19 = vor.u32 4788187, %v106_v18  ;;  %v110_v21 = vcvt.s32.f32 %v103_v17 }
  0xba   :  { %v108_v20 = vand.u32 2147483647, %v107_v19 }
  0xbc   :  { %v111_v22 = vmul.f32 %v110_v21, %v108_v20 }
  0xbe   :  { %v112_v24 = vxor.u32 2147483648, %v111_v22 }
  0xc0   :  { %v113_v25 = vsel %vm30_vm7, %v112_v24, %v111_v22 }
  0xc1   :  { %v116_v27 = vsel %vm29_vm8, %v335_v9, %v113_v25 }
  0xc2   :  { %276 = vcosq.f32 %v116_v27 }
  0xc3   :  { %278 = vsinq.f32 %v116_v27 }
  0xcc   :  { %v277_v32 = vpop.eup %276 }
  0xcd   :  { %v279_v33 = vpop.eup %278  ;;  %v128_v34 = vxor.u32 2147483648, %v277_v32 }
  0xce   :  { %v125_v35 = vxor.u32 2147483648, %v279_v33 }
  0xcf   :  { %v129_v14 = vsel %vm127_vm9, %v128_v34, %v279_v33  ;;  %v233_v36 = vsel %vm231_vm10, %v128_v34, %v279_v33 }
  0xd0   :  { %v126_v37 = vsel %vm124_vm11, %v277_v32, %v125_v35  ;;  %v230_v38 = vsel %vm228_vm12, %v277_v32, %v125_v35 }
  0xd1   :  { %v130_v39 = vsel %vm123_vm13, %v126_v37, %v129_v14  ;;  %v234_v40 = vsel %vm227_vm14, %v230_v38, %v233_v36 }
  0xd2   :  { %v131_v41 = vsel %vm120_vm15, nan, %v130_v39  ;;  %v235_v42 = vsel %vm120_vm15, nan, %v234_v40 }
  0xd3   :  { %132 = vst [vmem:[#allocation2 + $0x1] sm:$0xff] %v131_v41  ;;  %236 = vst [vmem:[#allocation2 + $0x9] sm:$0xff] %v235_v42 }
  0xd4   :  { %291 = shalt.err (!%p288_p4)
}
  0xd5   :  { %s292_s16 = scalar_lea.hbm %s370_s2, 384 }
  0xd6   :  { %p293_p5 = scmp.ne.s32.totalorder %s370_s2, %s292_s16  ;;  %p296_p6 = scmp.lt.u32.totalorder %s292_s16, %s370_s2 }
  0xd8   :  { %p298_p7 = pnand %p296_p6, %p293_p5 }
  0xda   :  { %301 = shalt.err (!%p298_p7)
}
  0xdb   :  { %s312_s21 = smov 128   ;;  %s313_s22 = smov 8  }
  0xdc   :  { %248 = dma.vmem_to_hbm [thread:$0]  %s243_s1, 384, %s370_s2, [#allocation3], %s312_s21, %s312_s21, %s313_s22  }
  0xdd   :  { %302 = dma.done.wait [#allocation3], 384  }
  0xde   :  { %303 = vsyncadd [#allocation3], 4294966912 }
  0xdf   :  { %252 = vsyncpa [#allocation3], 1 }

</bundles_post_ra>
